<compile_context>
chip_gen: v7x
topology: tpu7x:2x2x1
jax: 0.10.0
libtpu: 0.0.40
codegen_flags: <defaults>
</compile_context>

<pallas_src>
import math

import jax
import jax.numpy as jnp
from jax.experimental import pallas as pl
from jax.experimental.pallas import tpu as pltpu

SUBLANE_BF16 = 16   # bf16 packs 16 rows per vreg


def _round_up(n: int, m: int) -> int:
    return ((n + m - 1) // m) * m


def _lane_align(n: int) -> int:
    # 128-lane alignment always works; once a feature dim is large enough that the extra
    # padding is amortized, align to 256 to fully fill the 256x256 MXU on v6e/v7x.
    return _round_up(n, 256 if n >= 512 else 128)


def _batch_tiling(batch: int):
    """Returns (B_pad, TM, n_tiles) for a bf16 activation tile."""
    b_pad = _round_up(batch, SUBLANE_BF16)
    if b_pad >= 1024:
        tm = 512                                         # big tiles: fewer grid steps, bigger DMAs
    elif b_pad > SUBLANE_BF16:
        tm = _round_up(-(-b_pad // 2), SUBLANE_BF16)     # >=2 tiles so both v7x TCs get work
    else:
        tm = b_pad                                       # tiny batch: single tile
    b_pad = _round_up(b_pad, tm)
    return b_pad, tm, b_pad // tm


def policy_mlp_kernel(x_ref, w1_ref, b1_ref, w2_ref, b2_ref, w3_ref, b3_ref, o_ref):
    """One batch tile of the full 3-layer MLP, everything VMEM-resident.

    x_ref : (TM, D_pad)    bf16
    w1    : (D_pad, H_pad) bf16, b1 : (1, H_pad) f32
    w2    : (H_pad, H_pad) bf16, b2 : (1, H_pad) f32
    w3    : (H_pad, A_pad) bf16, b3 : (1, A_pad) f32
    o_ref : (TM, A_pad)    bf16
    """
    x = x_ref[...]  # already bf16 — no redundant cast

    # Layer 1: Linear + ReLU (bf16 MXU matmul, f32 accumulate; bias/ReLU in f32)
    h1 = jnp.dot(x, w1_ref[...], preferred_element_type=jnp.float32) + b1_ref[...]
    h1 = jnp.maximum(h1, 0.0)

    # Layer 2: Linear + ReLU
    h2 = jnp.dot(h1.astype(jnp.bfloat16), w2_ref[...],
                 preferred_element_type=jnp.float32) + b2_ref[...]
    h2 = jnp.maximum(h2, 0.0)

    # Layer 3: Linear (logits, no activation)
    logits = jnp.dot(h2.astype(jnp.bfloat16), w3_ref[...],
                     preferred_element_type=jnp.float32) + b3_ref[...]

    # bf16 store halves the (lane-padded) output writeback traffic.
    o_ref[...] = logits.astype(o_ref.dtype)


def make_policy_forward(params):
    """Pads / bf16-casts the parameters ONCE and returns a jitted forward(x) -> f32 logits."""
    w1, b1 = params["w1"], params["b1"]
    w2, b2 = params["w2"], params["b2"]
    w3, b3 = params["w3"], params["b3"]

    D, H = w1.shape
    A = w3.shape[1]
    D_pad, H_pad, A_pad = _lane_align(D), _lane_align(H), _lane_align(A)

    # One-time padding + bf16 cast of the matmul operands. Zero padding is exactly neutral
    # through Linear+ReLU stacks (padded bias cols are 0 -> ReLU(0)=0 -> zero rows feeding
    # the next layer's padded weight rows).
    w1p = jnp.zeros((D_pad, H_pad), jnp.bfloat16).at[:D, :H].set(w1.astype(jnp.bfloat16))
    w2p = jnp.zeros((H_pad, H_pad), jnp.bfloat16).at[:H, :H].set(w2.astype(jnp.bfloat16))
    w3p = jnp.zeros((H_pad, A_pad), jnp.bfloat16).at[:H, :A].set(w3.astype(jnp.bfloat16))
    b1p = jnp.zeros((1, H_pad), jnp.float32).at[:, :H].set(b1)
    b2p = jnp.zeros((1, H_pad), jnp.float32).at[:, :H].set(b2)
    b3p = jnp.zeros((1, A_pad), jnp.float32).at[:, :A].set(b3)

    # TODO(synk): if hidden_dim grows to where w2 (bf16) no longer fits VMEM (v7x: 64 MiB
    # physical), add a K/N grid axis with a pl.when-initialized f32 accumulator instead of
    # keeping all weights resident.

    @jax.jit
    def _forward(x, w1p, b1p, w2p, b2p, w3p, b3p):
        B = x.shape[0]
        B_pad, TM, n_tiles = _batch_tiling(B)

        # Per-call work: only the activation pad/cast (weights are already padded & cast).
        xp = jnp.zeros((B_pad, D_pad), jnp.bfloat16).at[:B, :D].set(x.astype(jnp.bfloat16))

        # Single-buffered, VMEM-resident weight/bias blocks (constant index maps => one DMA).
        def wspec(shape):
            return pl.BlockSpec(shape, lambda i: (0, 0), pipeline_mode=pl.Buffered(1))

        # Scoped-VMEM budget from the actual footprint (generous headroom, capped at v7x's
        # 64 MiB physical VMEM).
        weight_bytes = (D_pad * H_pad + H_pad * H_pad + H_pad * A_pad) * 2   # bf16, 1-buffered
        bias_bytes = (2 * H_pad + A_pad) * 4                                 # f32,  1-buffered
        act_bytes = 2 * TM * (D_pad + A_pad) * 2                             # x/out, 2-buffered bf16
        tmp_bytes = TM * (2 * H_pad + A_pad) * 4                             # f32 intermediates
        vmem_limit = int(min(64 * 2**20,
                             max(8 * 2**20,
                                 4 * (weight_bytes + bias_bytes + act_bytes + tmp_bytes))))

        out = pl.pallas_call(
            policy_mlp_kernel,
            out_shape=jax.ShapeDtypeStruct((B_pad, A_pad), jnp.bfloat16),
            grid_spec=pltpu.PrefetchScalarGridSpec(
                num_scalar_prefetch=0,
                grid=(n_tiles,),
                in_specs=[
                    pl.BlockSpec((TM, D_pad), lambda i: (i, 0)),   # activations: tiled over batch
                    wspec((D_pad, H_pad)),
                    wspec((1, H_pad)),
                    wspec((H_pad, H_pad)),
                    wspec((1, H_pad)),
                    wspec((H_pad, A_pad)),
                    wspec((1, A_pad)),
                ],
                out_specs=pl.BlockSpec((TM, A_pad), lambda i: (i, 0)),
            ),
            compiler_params=pltpu.CompilerParams(
                dimension_semantics=("parallel",),   # batch axis can shard across v7x's 2 TCs
                vmem_limit_bytes=vmem_limit,
            ),
        )(xp, w1p, b1p, w2p, b2p, w3p, b3p)

        # Padded batch rows hold ReLU(bias) garbage — always slice before use.
        # Cast back to f32 on the tiny (B, A) slice to keep the module's f32 output contract.
        return out[:B, :A].astype(jnp.float32)

    def forward(x):
        return _forward(x, w1p, b1p, w2p, b2p, w3p, b3p)

    return forward


def init_params(key, input_dim, hidden_dim, num_actions):
    """PyTorch nn.Linear-style init (U[-1/sqrt(fan_in), 1/sqrt(fan_in)]).

    Weights stored transposed relative to PyTorch, i.e. shape (in, out).
    """
    keys = jax.random.split(key, 6)

    def linear(kw, kb, fan_in, fan_out):
        bound = 1.0 / math.sqrt(fan_in)
        w = jax.random.uniform(kw, (fan_in, fan_out), jnp.float32, -bound, bound)
        b = jax.random.uniform(kb, (1, fan_out), jnp.float32, -bound, bound)
        return w, b

    w1, b1 = linear(keys[0], keys[1], input_dim, hidden_dim)
    w2, b2 = linear(keys[2], keys[3], hidden_dim, hidden_dim)
    w3, b3 = linear(keys[4], keys[5], hidden_dim, num_actions)
    return dict(w1=w1, b1=b1, w2=w2, b2=b2, w3=w3, b3=b3)


if __name__ == "__main__":
    # Small shapes consistent with the module's forward (toy RL policy net).
    batch = 2
    input_dim = 16
    hidden_dim = 32
    num_actions = 8

    key = jax.random.PRNGKey(0)
    k_x, k_p = jax.random.split(key)

    x = jax.random.normal(k_x, (batch, input_dim), jnp.float32)
    params = init_params(k_p, input_dim, hidden_dim, num_actions)

    forward = make_policy_forward(params)   # params padded / cast exactly once here

    logits = forward(x)
    jax.block_until_ready(logits)
    assert logits.shape == (batch, num_actions)
    assert logits.dtype == jnp.float32

    # Second call hits the cached executable with pre-padded params (no per-call weight work).
    logits2 = forward(x)
    jax.block_until_ready(logits2)
    assert jnp.array_equal(logits, logits2)

    # Reference 1: same bf16-operand / f32-accumulate / bf16-store arithmetic as the kernel.
    def ref_bf16(x, p):
        xb = x.astype(jnp.bfloat16)
        h1 = jnp.maximum(
            jnp.dot(xb, p["w1"].astype(jnp.bfloat16),
                    preferred_element_type=jnp.float32) + p["b1"], 0.0)
        h2 = jnp.maximum(
            jnp.dot(h1.astype(jnp.bfloat16), p["w2"].astype(jnp.bfloat16),
                    preferred_element_type=jnp.float32) + p["b2"], 0.0)
        out = jnp.dot(h2.astype(jnp.bfloat16), p["w3"].astype(jnp.bfloat16),
                      preferred_element_type=jnp.float32) + p["b3"]
        return out.astype(jnp.bfloat16).astype(jnp.float32)   # kernel stores bf16

    ref_b = ref_bf16(x, params)
    assert jnp.allclose(logits, ref_b, atol=1e-2, rtol=1e-2), \
        f"max abs err vs bf16 ref: {jnp.max(jnp.abs(logits - ref_b))}"

    # Reference 2: pure f32 reference (semantic sanity check, bf16-level tolerance).
    h1 = jnp.maximum(x @ params["w1"] + params["b1"], 0.0)
    h2 = jnp.maximum(h1 @ params["w2"] + params["b2"], 0.0)
    ref_f32 = h2 @ params["w3"] + params["b3"]
    assert jnp.allclose(logits, ref_f32, atol=5e-2, rtol=5e-2), \
        f"max abs err vs f32 ref: {jnp.max(jnp.abs(logits - ref_f32))}"

    print("KERNEL_OK")
</pallas_src>

<mosaic_0001>
module attributes {stable_mosaic.version = 11 : i64} {
  func.func @policy_mlp_kernel(%arg0: i32, %arg1: memref<16x128xbf16, #tpu.memory_space<vmem>>, %arg2: memref<128x128xbf16, #tpu.memory_space<vmem>>, %arg3: memref<1x128xf32, #tpu.memory_space<vmem>>, %arg4: memref<128x128xbf16, #tpu.memory_space<vmem>>, %arg5: memref<1x128xf32, #tpu.memory_space<vmem>>, %arg6: memref<128x128xbf16, #tpu.memory_space<vmem>>, %arg7: memref<1x128xf32, #tpu.memory_space<vmem>>, %arg8: memref<16x128xbf16, #tpu.memory_space<vmem>>) attributes {dimension_semantics = [#tpu.dimension_semantics<parallel>], iteration_bounds = array<i64: 1>, scalar_prefetch = 0 : i64, scratch_operands = 0 : i64, tpu.core_type = #tpu.core_type<tc>, window_params = [{transform_indices = @transform_0, window_bounds = array<i64: 16, 128>}, {pipeline_mode = #tpu.pipeline_mode<synchronous>, transform_indices = @transform_1, window_bounds = array<i64: 128, 128>}, {pipeline_mode = #tpu.pipeline_mode<synchronous>, transform_indices = @transform_2, window_bounds = array<i64: 1, 128>}, {pipeline_mode = #tpu.pipeline_mode<synchronous>, transform_indices = @transform_3, window_bounds = array<i64: 128, 128>}, {pipeline_mode = #tpu.pipeline_mode<synchronous>, transform_indices = @transform_4, window_bounds = array<i64: 1, 128>}, {pipeline_mode = #tpu.pipeline_mode<synchronous>, transform_indices = @transform_5, window_bounds = array<i64: 128, 128>}, {pipeline_mode = #tpu.pipeline_mode<synchronous>, transform_indices = @transform_6, window_bounds = array<i64: 1, 128>}, {transform_indices = @transform_7, window_bounds = array<i64: 16, 128>}]} {
    %c0 = arith.constant 0 : index
    %c0_0 = arith.constant 0 : index
    %0 = vector.load %arg1[%c0, %c0_0] : memref<16x128xbf16, #tpu.memory_space<vmem>>, vector<16x128xbf16>
    %c0_1 = arith.constant 0 : index
    %c0_2 = arith.constant 0 : index
    %1 = vector.load %arg2[%c0_1, %c0_2] : memref<128x128xbf16, #tpu.memory_space<vmem>>, vector<128x128xbf16>
    %cst = arith.constant dense<0.000000e+00> : vector<16x128xf32>
    %2 = tpu.matmul %0, %1, %cst {dimension_numbers = #tpu.dot_dimension_numbers<[1], [0], [0], [1], [0, 0, 1, 1], [], []>} : vector<16x128xbf16>, vector<128x128xbf16>, vector<16x128xf32> -> vector<16x128xf32>
    %c0_3 = arith.constant 0 : index
    %c0_4 = arith.constant 0 : index
    %3 = vector.load %arg3[%c0_3, %c0_4] : memref<1x128xf32, #tpu.memory_space<vmem>>, vector<1x128xf32>
    %4 = vector.broadcast %3 : vector<1x128xf32> to vector<16x128xf32>
    %5 = arith.addf %2, %4 : vector<16x128xf32>
    %cst_5 = arith.constant 0.000000e+00 : f32
    %6 = vector.broadcast %cst_5 : f32 to vector<16x128xf32>
    %7 = arith.maximumf %5, %6 : vector<16x128xf32>
    %8 = arith.truncf %7 : vector<16x128xf32> to vector<16x128xbf16>
    %c0_6 = arith.constant 0 : index
    %c0_7 = arith.constant 0 : index
    %9 = vector.load %arg4[%c0_6, %c0_7] : memref<128x128xbf16, #tpu.memory_space<vmem>>, vector<128x128xbf16>
    %cst_8 = arith.constant dense<0.000000e+00> : vector<16x128xf32>
    %10 = tpu.matmul %8, %9, %cst_8 {dimension_numbers = #tpu.dot_dimension_numbers<[1], [0], [0], [1], [0, 0, 1, 1], [], []>} : vector<16x128xbf16>, vector<128x128xbf16>, vector<16x128xf32> -> vector<16x128xf32>
    %c0_9 = arith.constant 0 : index
    %c0_10 = arith.constant 0 : index
    %11 = vector.load %arg5[%c0_9, %c0_10] : memref<1x128xf32, #tpu.memory_space<vmem>>, vector<1x128xf32>
    %12 = vector.broadcast %11 : vector<1x128xf32> to vector<16x128xf32>
    %13 = arith.addf %10, %12 : vector<16x128xf32>
    %cst_11 = arith.constant 0.000000e+00 : f32
    %14 = vector.broadcast %cst_11 : f32 to vector<16x128xf32>
    %15 = arith.maximumf %13, %14 : vector<16x128xf32>
    %16 = arith.truncf %15 : vector<16x128xf32> to vector<16x128xbf16>
    %c0_12 = arith.constant 0 : index
    %c0_13 = arith.constant 0 : index
    %17 = vector.load %arg6[%c0_12, %c0_13] : memref<128x128xbf16, #tpu.memory_space<vmem>>, vector<128x128xbf16>
    %cst_14 = arith.constant dense<0.000000e+00> : vector<16x128xf32>
    %18 = tpu.matmul %16, %17, %cst_14 {dimension_numbers = #tpu.dot_dimension_numbers<[1], [0], [0], [1], [0, 0, 1, 1], [], []>} : vector<16x128xbf16>, vector<128x128xbf16>, vector<16x128xf32> -> vector<16x128xf32>
    %c0_15 = arith.constant 0 : index
    %c0_16 = arith.constant 0 : index
    %19 = vector.load %arg7[%c0_15, %c0_16] : memref<1x128xf32, #tpu.memory_space<vmem>>, vector<1x128xf32>
    %20 = vector.broadcast %19 : vector<1x128xf32> to vector<16x128xf32>
    %21 = arith.addf %18, %20 : vector<16x128xf32>
    %22 = arith.truncf %21 : vector<16x128xf32> to vector<16x128xbf16>
    %c0_17 = arith.constant 0 : index
    %c0_18 = arith.constant 0 : index
    %23 = vector.load %arg8[%c0_17, %c0_18] : memref<16x128xbf16, #tpu.memory_space<vmem>>, vector<16x128xbf16>
    tpu.vector_store %arg8[%c0_17, %c0_18], %22 {strides = array<i32>} : memref<16x128xbf16, #tpu.memory_space<vmem>>, vector<16x128xbf16>,
    return
  }
  func.func @transform_0(%arg0: i32) -> (i32, i32) {
    %c0_i32 = arith.constant 0 : i32
    %c0_i32_0 = arith.constant 0 : i32
    return %arg0, %c0_i32 : i32, i32
  }
  func.func @transform_1(%arg0: i32) -> (i32, i32) {
    %c0_i32 = arith.constant 0 : i32
    %c0_i32_0 = arith.constant 0 : i32
    %c0_i32_1 = arith.constant 0 : i32
    return %c0_i32, %c0_i32_0 : i32, i32
  }
  func.func @transform_2(%arg0: i32) -> (i32, i32) {
    %c0_i32 = arith.constant 0 : i32
    %c0_i32_0 = arith.constant 0 : i32
    %c0_i32_1 = arith.constant 0 : i32
    return %c0_i32, %c0_i32_0 : i32, i32
  }
  func.func @transform_3(%arg0: i32) -> (i32, i32) {
    %c0_i32 = arith.constant 0 : i32
    %c0_i32_0 = arith.constant 0 : i32
    %c0_i32_1 = arith.constant 0 : i32
    return %c0_i32, %c0_i32_0 : i32, i32
  }
  func.func @transform_4(%arg0: i32) -> (i32, i32) {
    %c0_i32 = arith.constant 0 : i32
    %c0_i32_0 = arith.constant 0 : i32
    %c0_i32_1 = arith.constant 0 : i32
    return %c0_i32, %c0_i32_0 : i32, i32
  }
  func.func @transform_5(%arg0: i32) -> (i32, i32) {
    %c0_i32 = arith.constant 0 : i32
    %c0_i32_0 = arith.constant 0 : i32
    %c0_i32_1 = arith.constant 0 : i32
    return %c0_i32, %c0_i32_0 : i32, i32
  }
  func.func @transform_6(%arg0: i32) -> (i32, i32) {
    %c0_i32 = arith.constant 0 : i32
    %c0_i32_0 = arith.constant 0 : i32
    %c0_i32_1 = arith.constant 0 : i32
    return %c0_i32, %c0_i32_0 : i32, i32
  }
  func.func @transform_7(%arg0: i32) -> (i32, i32) {
    %c0_i32 = arith.constant 0 : i32
    %c0_i32_0 = arith.constant 0 : i32
    return %arg0, %c0_i32 : i32, i32
  }
}

</mosaic_0001>

<bundles_post_ra>
// kernel: _forward.1
= control target key start
LH: loop header
LB: loop body
LE: loop exit
PB: predicated region body
PF: predicated region fallthrough
CT: control target
= control target key end

     0   :  { %12 = vsyncpa [#allocation3], 0  ;;  %s804_s0 = inlined_call_operand.vmem [shape: bf16[16,128], index: 0, kind: input, shape index: {}]   ;;  %s805_s1 = inlined_call_operand.hbm [shape: bf16[128,128], index: 1, kind: input, shape index: {}]   ;;  %s806_s2 = inlined_call_operand.vmem [shape: f32[1,128], index: 2, kind: input, shape index: {}]   ;;  %s807_s3 = inlined_call_operand.hbm [shape: bf16[128,128], index: 3, kind: input, shape index: {}]   ;;  %s808_s4 = inlined_call_operand.vmem [shape: f32[1,128], index: 4, kind: input, shape index: {}]   ;;  %s809_s5 = inlined_call_operand.hbm [shape: bf16[128,128], index: 5, kind: input, shape index: {}]   ;;  %s810_s6 = inlined_call_operand.vmem [shape: f32[1,128], index: 6, kind: input, shape index: {}]   ;;  %s811_s7 = inlined_call_operand.vmem [shape: bf16[16,128], index: 7, kind: output, shape index: {}]  }
   0x1   :  { %13 = vsyncpa [#allocation5], 0  ;;  %s660_s24 = smov [#allocation4]   ;;  %s661_s26 = smov [#allocation2]  }
   0x2   :  { %s35_s25 = sshll.u32 %s660_s24, 4  ;;  %s21_s27 = sshll.u32 %s661_s26, 4  ;;  %s36_s25 = int_to_ptr.vmem [resolvable:$true] %s35_s25  ;;  %s707_s27 = int_to_ptr.vmem [resolvable:$true] %s21_s27 }
   0x3   :  { %s590_s30 = scalar_lea.hbm %s807_s3, 1024 }
   0x4   :  { %p591_p0 = scmp.ne.s32.totalorder %s807_s3, %s590_s30  ;;  %p594_p1 = scmp.lt.u32.totalorder %s590_s30, %s807_s3 }
   0x6   :  { %p596_p2 = pnand %p594_p1, %p591_p0 }
   0x8   :  { %599 = shalt.err (!%p596_p2)
}
   0x9   :  { %s600_s12 = scalar_lea.vmem %s36_s25, 1024  ;;  %p605_p4 = scmp.lt.s32.totalorder %s36_s25, %s36_s25 }
   0xa   :  { %p601_p3 = scmp.ne.s32.totalorder %s36_s25, %s600_s12  ;;  %p606_p5 = scmp.lt.s32.totalorder %s600_s12, %s600_s12 }
   0xc   :  { %p607_p6 = por %p606_p5, %p605_p4 }
   0xe   :  { %p608_p7 = pnand %p607_p6, %p601_p3 }
  0x10   :  { %611 = shalt.err (!%p608_p7)
}
  0x11   :  { %s662_s13 = smov 64   ;;  %s663_s14 = smov 4  }
  0x12   :  { %41 = dma.hbm_to_vmem [thread:$0]  %s807_s3, 1024, %s36_s25, [#allocation5], %s662_s13, %s662_s13, %s663_s14  }
  0x13   :  { %s612_s19 = scalar_lea.hbm %s805_s1, 1024 }
  0x14   :  { %p613_p8 = scmp.ne.s32.totalorder %s805_s1, %s612_s19  ;;  %p616_p9 = scmp.lt.u32.totalorder %s612_s19, %s805_s1 }
  0x16   :  { %p618_p10 = pnand %p616_p9, %p613_p8 }
  0x18   :  { %621 = shalt.err (!%p618_p10)
}
  0x19   :  { %s622_s24 = scalar_lea.vmem %s707_s27, 1024  ;;  %p627_p12 = scmp.lt.s32.totalorder %s707_s27, %s707_s27 }
  0x1a   :  { %p623_p11 = scmp.ne.s32.totalorder %s707_s27, %s622_s24  ;;  %p628_p13 = scmp.lt.s32.totalorder %s622_s24, %s622_s24 }
  0x1c   :  { %p629_p0 = por %p628_p13, %p627_p12 }
  0x1e   :  { %p630_p1 = pnand %p629_p0, %p623_p11 }
  0x20   :  { %633 = shalt.err (!%p630_p1)
}
  0x21   :  { %27 = dma.hbm_to_vmem [thread:$0]  %s805_s1, 1024, %s707_s27, [#allocation3], %s662_s13, %s662_s13, %s663_s14  }
  0x22   :  { %s664_s26 = smov [#allocation6]   ;;  %s634_s8 = scalar_lea.hbm %s809_s5, 1024 }
  0x23   :  { %s49_s28 = sshll.u32 %s664_s26, 4  ;;  %p635_p2 = scmp.ne.s32.totalorder %s809_s5, %s634_s8  ;;  %s50_s28 = int_to_ptr.vmem [resolvable:$true] %s49_s28 }
  0x24   :  { %p638_p3 = scmp.lt.u32.totalorder %s634_s8, %s809_s5 }
  0x26   :  { %p640_p4 = pnand %p638_p3, %p635_p2 }
  0x28   :  { %643 = shalt.err (!%p640_p4)
}
  0x29   :  { %s644_s15 = scalar_lea.vmem %s50_s28, 1024  ;;  %p649_p6 = scmp.lt.s32.totalorder %s50_s28, %s50_s28 }
  0x2a   :  { %p645_p5 = scmp.ne.s32.totalorder %s50_s28, %s644_s15  ;;  %p650_p7 = scmp.lt.s32.totalorder %s644_s15, %s644_s15 }
  0x2c   :  { %p651_p8 = por %p650_p7, %p649_p6 }
  0x2e   :  { %p652_p9 = pnand %p651_p8, %p645_p5 }
  0x30   :  { %655 = shalt.err (!%p652_p9)
}
  0x31   :  { %55 = dma.hbm_to_vmem [thread:$0]  %s809_s5, 1024, %s50_s28, [#allocation5], %s662_s13, %s662_s13, %s663_s14  }
  0x32   :  { %656 = dma.done.wait [#allocation3], 1024  }
  0x33   :  { %657 = vsyncadd [#allocation3], 4294966272 }
  0x34   :  { %658 = dma.done.wait [#allocation5], 2048  }
  0x35   :  { %659 = vsyncadd [#allocation5], 4294965248  ;;  %v665_v0 = vmov 0.0   ;;  %vm666_vm0 = vmmov 0   ;;  %v565_v1 = vld [vmem:[#allocation2] sm:$0xff]   ;;  %v566_v2 = vld [vmem:[#allocation2 + $0x8] sm:$0xff]  }
  0x36   :  { %498 = vmatprep.subr.bf16.mxu0 %v665_v0  ;;  %514 = vmatprep.mubr.msk.bf16.mxu0 %vm666_vm0, %v665_v0  ;;  %v567_v3 = vld [vmem:[#allocation2 + $0x10] sm:$0xff]   ;;  %v574_v4 = vld [vmem:[#allocation4] sm:$0xff]   ;;  %v568_v5 = vld [vmem:[#allocation2 + $0x18] sm:$0xff]  }
  0x37   :  { %518 = vmatprep.subr.bf16.mxu1 %v665_v0  ;;  %534 = vmatprep.mubr.msk.bf16.mxu1 %vm666_vm0, %v665_v0  ;;  %v575_v6 = vld [vmem:[#allocation4 + $0x8] sm:$0xff]   ;;  %v569_v7 = vld [vmem:[#allocation2 + $0x20] sm:$0xff]   ;;  %v576_v8 = vld [vmem:[#allocation4 + $0x10] sm:$0xff]  }
  0x38   :  { %499 = vmatpush3.bf16.msra.mxu0 %v565_v1  ;;  %519 = vmatpush3.bf16.msra.mxu1 %v574_v4  ;;  %v570_v9 = vld [vmem:[#allocation2 + $0x28] sm:$0xff]   ;;  %v577_v10 = vld [vmem:[#allocation4 + $0x18] sm:$0xff]   ;;  %v571_v11 = vld [vmem:[#allocation2 + $0x30] sm:$0xff]  }
  0x39   :  { %500 = vmatprep.subr.bf16.mxu0 %v665_v0  ;;  %520 = vmatprep.subr.bf16.mxu1 %v665_v0  ;;  %v578_v12 = vld [vmem:[#allocation4 + $0x20] sm:$0xff]   ;;  %v572_v13 = vld [vmem:[#allocation2 + $0x38] sm:$0xff]   ;;  %v579_v14 = vld [vmem:[#allocation4 + $0x28] sm:$0xff]  }
  0x3a   :  { %v573_v15 = vld [vmem:[%s804_s0] sm:$0xff]   ;;  %v580_v16 = vld [vmem:[#allocation4 + $0x30] sm:$0xff]   ;;  %v581_v17 = vld [vmem:[#allocation4 + $0x38] sm:$0xff]  }
  0x3b   :  { %v582_v18 = vld [vmem:[#allocation6] sm:$0xff]   ;;  %v583_v19 = vld [vmem:[#allocation6 + $0x8] sm:$0xff]   ;;  %v584_v20 = vld [vmem:[#allocation6 + $0x10] sm:$0xff]  }
  0x3c   :  { %501 = vmatpush3.bf16.msra.mxu0 %v566_v2  ;;  %521 = vmatpush3.bf16.msra.mxu1 %v575_v6  ;;  %v585_v21 = vld [vmem:[#allocation6 + $0x18] sm:$0xff]   ;;  %v586_v22 = vld [vmem:[#allocation6 + $0x20] sm:$0xff]   ;;  %v587_v23 = vld [vmem:[#allocation6 + $0x28] sm:$0xff]  }
  0x3d   :  { %502 = vmatprep.subr.bf16.mxu0 %v665_v0  ;;  %522 = vmatprep.subr.bf16.mxu1 %v665_v0  ;;  %v434_v24 = vld [vmem:[%s806_s2] ss:$0 sm:$0xff]  ;;  %v588_v34 = vld [vmem:[#allocation6 + $0x30] sm:$0xff]   ;;  %v589_v35 = vld [vmem:[#allocation6 + $0x38] sm:$0xff]  }
  0x3e   :  { %v444_v36 = vld [vmem:[%s808_s4] ss:$0 sm:$0xff] }
  0x3f   :  { %v453_v46 = vld [vmem:[%s810_s6] ss:$0 sm:$0xff] }
  0x40   :  { %503 = vmatpush3.bf16.msra.mxu0 %v567_v3  ;;  %523 = vmatpush3.bf16.msra.mxu1 %v576_v8 }
  0x41   :  { %504 = vmatprep.subr.bf16.mxu0 %v665_v0  ;;  %524 = vmatprep.subr.bf16.mxu1 %v665_v0 }
  0x44   :  { %505 = vmatpush3.bf16.msra.mxu0 %v568_v5  ;;  %525 = vmatpush3.bf16.msra.mxu1 %v577_v10 }
  0x45   :  { %506 = vmatprep.subr.bf16.mxu0 %v665_v0  ;;  %526 = vmatprep.subr.bf16.mxu1 %v665_v0 }
  0x48   :  { %507 = vmatpush3.bf16.msra.mxu0 %v569_v7  ;;  %527 = vmatpush3.bf16.msra.mxu1 %v578_v12 }
  0x49   :  { %508 = vmatprep.subr.bf16.mxu0 %v665_v0  ;;  %528 = vmatprep.subr.bf16.mxu1 %v665_v0 }
  0x4c   :  { %509 = vmatpush3.bf16.msra.mxu0 %v570_v9  ;;  %529 = vmatpush3.bf16.msra.mxu1 %v579_v14 }
  0x4d   :  { %510 = vmatprep.subr.bf16.mxu0 %v665_v0  ;;  %530 = vmatprep.subr.bf16.mxu1 %v665_v0 }
  0x50   :  { %511 = vmatpush3.bf16.msra.mxu0 %v571_v11  ;;  %531 = vmatpush3.bf16.msra.mxu1 %v580_v16 }
  0x51   :  { %512 = vmatprep.subr.bf16.mxu0 %v665_v0  ;;  %532 = vmatprep.subr.bf16.mxu1 %v665_v0 }
  0x54   :  { %513 = vmatpush3.bf16.msra.mxu0 %v572_v13  ;;  %533 = vmatpush3.bf16.msra.mxu1 %v581_v17 }
  0x55   :  { %538 = vmatprep.subr.bf16.mxu0 %v665_v0 }
  0x57   :  { %515 = vmatmul.mubr.bf16.vlgmr.msra.gmra.mrb[0].mxu0 %v573_v15 }
  0x58   :  { %554 = vmatprep.mubr.msk.bf16.mxu0 %vm666_vm0, %v665_v0  ;;  %539 = vmatpush3.bf16.msra.mxu0 %v582_v18 }
  0x59   :  { %540 = vmatprep.subr.bf16.mxu0 %v665_v0 }
  0x5c   :  { %541 = vmatpush3.bf16.msra.mxu0 %v583_v19 }
  0x5d   :  { %542 = vmatprep.subr.bf16.mxu0 %v665_v0 }
  0x60   :  { %543 = vmatpush3.bf16.msra.mxu0 %v584_v20 }
  0x61   :  { %544 = vmatprep.subr.bf16.mxu0 %v665_v0 }
  0x64   :  { %545 = vmatpush3.bf16.msra.mxu0 %v585_v21 }
  0x65   :  { %546 = vmatprep.subr.bf16.mxu0 %v665_v0 }
  0x68   :  { %547 = vmatpush3.bf16.msra.mxu0 %v586_v22 }
  0x69   :  { %548 = vmatprep.subr.bf16.mxu0 %v665_v0 }
  0x6c   :  { %549 = vmatpush3.bf16.msra.mxu0 %v587_v23 }
  0x6d   :  { %550 = vmatprep.subr.bf16.mxu0 %v665_v0 }
  0x70   :  { %551 = vmatpush3.bf16.msra.mxu0 %v588_v34 }
  0x71   :  { %552 = vmatprep.subr.bf16.mxu0 %v665_v0 }
  0x74   :  { %553 = vmatpush3.bf16.msra.mxu0 %v589_v35 }
 0x12a   :  { %v181_v25 = vpop.f32.mrb[0].mxu0 }
 0x12b   :  { %v182_v26 = vadd.f32 %v434_v24, %v181_v25  ;;  %v516_v27 = vpop.f32.mrb[1].mxu0 }
 0x12c   :  { %v184_v28 = vpop.f32.mrb[2].mxu0 }
 0x12d   :  { %v185_v29 = vadd.f32 %v434_v24, %v184_v28  ;;  %v517_v30 = vpop.f32.mrb[3].mxu0  ;;  %v188_v31 = vmax.f32 %v182_v26, 0.0 }
 0x12f   :  { %v189_v32 = vmax.f32 %v185_v29, 0.0 }
 0x131   :  { %v190_v33 = vpack.c.bf16 %v189_v32, %v188_v31 }
 0x133   :  { %535 = vmatmul.mubr.bf16.vlgmr.msra.gmra.mrb[0].mxu1 %v190_v33 }
 0x206   :  { %v296_v37 = vpop.f32.mrb[0].mxu1 }
 0x207   :  { %v297_v38 = vadd.f32 %v444_v36, %v296_v37  ;;  %v536_v39 = vpop.f32.mrb[1].mxu1 }
 0x208   :  { %v299_v40 = vpop.f32.mrb[2].mxu1 }
 0x209   :  { %v300_v41 = vadd.f32 %v444_v36, %v299_v40  ;;  %v537_v42 = vpop.f32.mrb[3].mxu1  ;;  %v303_v43 = vmax.f32 %v297_v38, 0.0 }
 0x20b   :  { %v304_v44 = vmax.f32 %v300_v41, 0.0 }
 0x20d   :  { %v305_v45 = vpack.c.bf16 %v304_v44, %v303_v43 }
 0x20f   :  { %555 = vmatmul.mubr.bf16.vlgmr.msra.gmra.mrb[4].mxu0 %v305_v45 }
 0x2e2   :  { %v411_v47 = vpop.f32.mrb[4].mxu0 }
 0x2e3   :  { %v556_v48 = vpop.f32.mrb[5].mxu0  ;;  %v412_v50 = vadd.f32 %v453_v46, %v411_v47 }
 0x2e4   :  { %v414_v49 = vpop.f32.mrb[6].mxu0 }
 0x2e5   :  { %v415_v51 = vadd.f32 %v453_v46, %v414_v49  ;;  %v557_v52 = vpop.f32.mrb[7].mxu0 }
 0x2e7   :  { %v469_v53 = vpack.c.bf16 %v415_v51, %v412_v50 }
 0x2e9   :  { %470 = vst [vmem:[%s811_s7] sm:$0xff] %v469_v53  }
 0x2ea   :  { %432 = vsyncpa [#allocation3], 1 }
 0x2eb   :  { %433 = vsyncpa [#allocation5], 1 }

</bundles_post_ra>
